<compile_context>
chip_gen: v7x
topology: tpu7x:2x2x1
jax: 0.10.0
libtpu: 0.0.40
codegen_flags: <defaults>
</compile_context>

<pallas_src>
import functools

import jax
import jax.numpy as jnp
from jax import lax
from jax.experimental import pallas as pl
from jax.experimental.pallas import tpu as pltpu


# ----------------------------------------------------------------------------
# Pallas kernel: one grid step = B_blk windows, native (B_blk, C, N) blocks.
# ----------------------------------------------------------------------------
def _window_attention_kernel(x_ref, wqkv_ref, bqkv_ref, wproj_ref, bproj_ref,
                             o_ref, *, num_heads, head_dim, scale,
                             windows_per_block, tokens_per_window):
    C = num_heads * head_dim
    B = windows_per_block
    N = tokens_per_window
    G = B * num_heads

    x = x_ref[...]  # (B, C, N): channel-major per window, native layout.

    # Fused qkv projection, batched over the window axis.  The (3C, C) weight
    # is tiny, so broadcasting it across the window batch is cheap and keeps
    # the contraction (over C) on aligned sublane slabs.
    w_qkv = jnp.broadcast_to(wqkv_ref[...], (B, 3 * C, C))
    qkv = jnp.einsum('boc,bcn->bon', w_qkv, x,
                     preferred_element_type=jnp.float32)
    qkv = qkv + bqkv_ref[...]          # (3C, 1) bias broadcasts over windows/tokens

    # Split q/k/v; windows*heads become the batch axis, head_dim (=8) stays on
    # sublanes (aligned vreg slabs, no lane slicing).
    q = qkv[:, 0 * C:1 * C, :].reshape(G, head_dim, N)
    k = qkv[:, 1 * C:2 * C, :].reshape(G, head_dim, N)
    v = qkv[:, 2 * C:3 * C, :].reshape(G, head_dim, N)

    # F.normalize(p=2, dim=-1, eps=1e-12): per-token L2 norm over head_dim.
    # max(sqrt(s), 1e-12) == sqrt(max(s, 1e-24)); rsqrt runs on the EUP.
    # Fold the softmax scale into q (scale * (q_n . k_n) == (scale*q_n) . k_n).
    q = q * (scale * lax.rsqrt(
        jnp.maximum(jnp.sum(q * q, axis=1, keepdims=True), 1e-24)))
    k = k * lax.rsqrt(
        jnp.maximum(jnp.sum(k * k, axis=1, keepdims=True), 1e-24))

    # Per-window, per-head scores: (G, N, N).  No cross-window entries exist,
    # so no mask is needed.  |s| <= scale (~0.354), so exp cannot overflow and
    # the module's explicit row-max subtraction is redundant (softmax is
    # shift-invariant) — results are identical.
    s = jnp.einsum('gdn,gdm->gnm', q, k, preferred_element_type=jnp.float32)

    p = jnp.exp(s)
    inv_denom = 1.0 / jnp.sum(p, axis=-1, keepdims=True)   # exact, (G, N, 1)
    p = p * inv_denom
    p = jnp.clip(p, 1e-6, 1.0)         # matches torch clamp; no renormalization

    # attn @ v, channel-major result: (G, head_dim, N) -> (B, C, N)
    # (heads stacked along channels, matching the torch transpose+reshape).
    o = jnp.einsum('gdm,gnm->gdn', v, p, preferred_element_type=jnp.float32)
    o = o.reshape(B, C, N)

    # Output projection (batched over windows) + bias.
    w_p = jnp.broadcast_to(wproj_ref[...], (B, C, C))
    out = jnp.einsum('boc,bcn->bon', w_p, o, preferred_element_type=jnp.float32)
    out = out + bproj_ref[...]
    o_ref[...] = out.astype(o_ref.dtype)


def _pick_windows_per_block(B_, N, num_heads, head_dim,
                            vmem_budget_bytes=6 << 20):
    """Largest divisor of B_ that (a) keeps the per-step f32 intermediates
    within a conservative VMEM budget (safe for v5e's 16 MiB scoped default)
    and (b) leaves at least 2 grid steps when B_ > 1 (v7x has 2 TensorCores)."""
    C = num_heads * head_dim
    # Rough per-window f32 footprint: scores + probs + qkv/q/k/v/o slabs.
    per_window_bytes = 4 * (2 * num_heads * N * N + 12 * C * N)
    cap = max(1, vmem_budget_bytes // per_window_bytes)
    if B_ > 1:
        cap = min(cap, B_ // 2)
    best = 1
    for d in range(1, B_ + 1):
        if B_ % d == 0 and d <= cap:
            best = d
    return best


def window_attention_pallas(x, wqkv, bqkv, wproj, bproj, num_heads):
    """x: (B_, C, H, W) float32. Weights follow torch nn.Linear convention:
       wqkv:(3C, C), bqkv:(3C,), wproj:(C, C), bproj:(C,)."""
    B_, C, H, W = x.shape
    N = H * W
    head_dim = C // num_heads
    scale = head_dim ** (-0.5)

    B_blk = _pick_windows_per_block(B_, N, num_heads, head_dim)
    grid = (B_ // B_blk,)

    # Native layout end-to-end: only free reshapes, no HBM transpose passes.
    x3 = x.reshape(B_, C, N)
    bqkv_col = bqkv.reshape(3 * C, 1)
    bproj_col = bproj.reshape(C, 1)

    kernel = functools.partial(
        _window_attention_kernel,
        num_heads=num_heads, head_dim=head_dim, scale=scale,
        windows_per_block=B_blk, tokens_per_window=N)

    out3 = pl.pallas_call(
        kernel,
        out_shape=jax.ShapeDtypeStruct((B_, C, N), x.dtype),
        grid_spec=pltpu.PrefetchScalarGridSpec(
            num_scalar_prefetch=0,
            grid=grid,
            in_specs=[
                # x: last two block dims equal the full (C, N) extents -> legal
                # for any window size (including N=49).
                pl.BlockSpec((B_blk, C, N), lambda b: (b, 0, 0)),
                pl.BlockSpec((3 * C, C), lambda b: (0, 0)),      # wqkv
                pl.BlockSpec((3 * C, 1), lambda b: (0, 0)),      # bqkv column
                pl.BlockSpec((C, C), lambda b: (0, 0)),          # wproj
                pl.BlockSpec((C, 1), lambda b: (0, 0)),          # bproj column
            ],
            out_specs=pl.BlockSpec((B_blk, C, N), lambda b: (b, 0, 0)),
        ),
        compiler_params=pltpu.CompilerParams(
            dimension_semantics=("parallel",)),
    )(x3, wqkv, bqkv_col, wproj, bproj_col)

    return out3.reshape(B_, C, H, W)


# ----------------------------------------------------------------------------
# Pure-JAX reference (mirrors the PyTorch forward exactly)
# ----------------------------------------------------------------------------
def window_attention_ref(x, wqkv, bqkv, wproj, bproj, num_heads):
    B_, C, H, W = x.shape
    N = H * W
    hd = C // num_heads
    scale = hd ** (-0.5)

    xt = jnp.transpose(x.reshape(B_, C, N), (0, 2, 1))        # (B_, N, C)
    qkv = xt @ wqkv.T + bqkv                                  # (B_, N, 3C)
    qkv = qkv.reshape(B_, N, 3, num_heads, hd).transpose(2, 0, 3, 1, 4)
    q, k, v = qkv[0], qkv[1], qkv[2]                          # (B_, nh, N, hd)
    q = q / jnp.maximum(jnp.linalg.norm(q, axis=-1, keepdims=True), 1e-12)
    k = k / jnp.maximum(jnp.linalg.norm(k, axis=-1, keepdims=True), 1e-12)
    attn = (q @ jnp.swapaxes(k, -2, -1)) * scale
    attn = attn - jnp.max(attn, axis=-1, keepdims=True)
    attn = jax.nn.softmax(attn, axis=-1)
    attn = jnp.clip(attn, 1e-6, 1.0)
    out = (attn @ v).transpose(0, 2, 1, 3).reshape(B_, N, C)
    out = out @ wproj.T + bproj
    return jnp.transpose(out, (0, 2, 1)).reshape(B_, C, H, W)


if __name__ == "__main__":
    # Small, module-consistent shapes: dim=32, window_size=8, num_heads=4.
    B_, dim, window_size, num_heads = 2, 32, 8, 4
    H = W = window_size

    key = jax.random.PRNGKey(0)
    kx, kw1, kb1, kw2, kb2 = jax.random.split(key, 5)

    x = jax.random.normal(kx, (B_, dim, H, W), dtype=jnp.float32)
    # Deterministic synthetic parameters (nn.Linear shapes).
    wqkv = 0.05 * jax.random.normal(kw1, (3 * dim, dim), dtype=jnp.float32)
    bqkv = 0.05 * jax.random.normal(kb1, (3 * dim,), dtype=jnp.float32)
    wproj = 0.05 * jax.random.normal(kw2, (dim, dim), dtype=jnp.float32)
    bproj = 0.05 * jax.random.normal(kb2, (dim,), dtype=jnp.float32)

    out = window_attention_pallas(x, wqkv, bqkv, wproj, bproj, num_heads)
    out = jax.block_until_ready(out)

    ref = window_attention_ref(x, wqkv, bqkv, wproj, bproj, num_heads)
    assert out.shape == (B_, dim, H, W)
    assert jnp.allclose(out, ref, atol=1e-4, rtol=1e-4), "mismatch vs reference"

    print("KERNEL_OK")
</pallas_src>

<mosaic_0001>
module attributes {stable_mosaic.version = 11 : i64} {
  func.func @_window_attention_kernel(%arg0: i32, %arg1: memref<1x32x64xf32, #tpu.memory_space<vmem>>, %arg2: memref<96x32xf32, #tpu.memory_space<vmem>>, %arg3: memref<96x1xf32, #tpu.memory_space<vmem>>, %arg4: memref<32x32xf32, #tpu.memory_space<vmem>>, %arg5: memref<32x1xf32, #tpu.memory_space<vmem>>, %arg6: memref<1x32x64xf32, #tpu.memory_space<vmem>>) attributes {dimension_semantics = [#tpu.dimension_semantics<parallel>], iteration_bounds = array<i64: 2>, scalar_prefetch = 0 : i64, scratch_operands = 0 : i64, tpu.core_type = #tpu.core_type<tc>, window_params = [{transform_indices = @transform_0, window_bounds = array<i64: 1, 32, 64>}, {pipeline_mode = #tpu.pipeline_mode<synchronous>, transform_indices = @transform_1, window_bounds = array<i64: 96, 32>}, {pipeline_mode = #tpu.pipeline_mode<synchronous>, transform_indices = @transform_2, window_bounds = array<i64: 96, 1>}, {pipeline_mode = #tpu.pipeline_mode<synchronous>, transform_indices = @transform_3, window_bounds = array<i64: 32, 32>}, {pipeline_mode = #tpu.pipeline_mode<synchronous>, transform_indices = @transform_4, window_bounds = array<i64: 32, 1>}, {transform_indices = @transform_5, window_bounds = array<i64: 1, 32, 64>}]} {
    %c0 = arith.constant 0 : index
    %c0_0 = arith.constant 0 : index
    %c0_1 = arith.constant 0 : index
    %0 = vector.load %arg1[%c0, %c0_0, %c0_1] : memref<1x32x64xf32, #tpu.memory_space<vmem>>, vector<1x32x64xf32>
    %c0_2 = arith.constant 0 : index
    %c0_3 = arith.constant 0 : index
    %1 = vector.load %arg2[%c0_2, %c0_3] : memref<96x32xf32, #tpu.memory_space<vmem>>, vector<96x32xf32>
    %2 = vector.shape_cast %1 : vector<96x32xf32> to vector<1x96x32xf32>
    "tpu.trace_start"() <{level = 10 : i32, message = "boc,bcn->bon"}> : () -> ()
    %cst = arith.constant dense<0.000000e+00> : vector<1x96x64xf32>
    %3 = tpu.matmul %2, %0, %cst {dimension_numbers = #tpu.dot_dimension_numbers<[2], [1], [1], [2], [0, 0, 0, 1, 1, 2], [0], [0]>} : vector<1x96x32xf32>, vector<1x32x64xf32>, vector<1x96x64xf32> -> vector<1x96x64xf32>
    "tpu.trace_stop"() : () -> ()
    %c0_4 = arith.constant 0 : index
    %c0_5 = arith.constant 0 : index
    %4 = vector.load %arg3[%c0_4, %c0_5] : memref<96x1xf32, #tpu.memory_space<vmem>>, vector<96x1xf32>
    %5 = vector.shape_cast %4 : vector<96x1xf32> to vector<1x96x1xf32>
    %6 = vector.broadcast %5 : vector<1x96x1xf32> to vector<1x96x64xf32>
    %7 = arith.addf %3, %6 : vector<1x96x64xf32>
    %8 = vector.extract_strided_slice %7 {offsets = [0, 0, 0], sizes = [1, 32, 64], strides = [1, 1, 1]} : vector<1x96x64xf32> to vector<1x32x64xf32>
    %9 = vector.shape_cast %8 : vector<1x32x64xf32> to vector<4x8x64xf32>
    %10 = vector.extract_strided_slice %7 {offsets = [0, 32, 0], sizes = [1, 32, 64], strides = [1, 1, 1]} : vector<1x96x64xf32> to vector<1x32x64xf32>
    %11 = vector.shape_cast %10 : vector<1x32x64xf32> to vector<4x8x64xf32>
    %12 = vector.extract_strided_slice %7 {offsets = [0, 64, 0], sizes = [1, 32, 64], strides = [1, 1, 1]} : vector<1x96x64xf32> to vector<1x32x64xf32>
    %13 = vector.shape_cast %12 : vector<1x32x64xf32> to vector<4x8x64xf32>
    %14 = arith.mulf %9, %9 : vector<4x8x64xf32>
    %cst_6 = arith.constant dense<0.000000e+00> : vector<4x64xf32>
    %15 = vector.multi_reduction <add>, %14, %cst_6 [1] : vector<4x8x64xf32> to vector<4x64xf32>
    %16 = vector.shape_cast %15 : vector<4x64xf32> to vector<4x1x64xf32>
    %cst_7 = arith.constant 1.000000e-24 : f32
    %17 = vector.broadcast %cst_7 : f32 to vector<4x1x64xf32>
    %18 = arith.maximumf %16, %17 : vector<4x1x64xf32>
    %19 = math.rsqrt %18 : vector<4x1x64xf32>
    %cst_8 = arith.constant 0.353553385 : f32
    %20 = vector.broadcast %cst_8 : f32 to vector<4x1x64xf32>
    %21 = arith.mulf %20, %19 : vector<4x1x64xf32>
    %22 = vector.broadcast %21 : vector<4x1x64xf32> to vector<4x8x64xf32>
    %23 = arith.mulf %9, %22 : vector<4x8x64xf32>
    %24 = arith.mulf %11, %11 : vector<4x8x64xf32>
    %cst_9 = arith.constant dense<0.000000e+00> : vector<4x64xf32>
    %25 = vector.multi_reduction <add>, %24, %cst_9 [1] : vector<4x8x64xf32> to vector<4x64xf32>
    %26 = vector.shape_cast %25 : vector<4x64xf32> to vector<4x1x64xf32>
    %cst_10 = arith.constant 1.000000e-24 : f32
    %27 = vector.broadcast %cst_10 : f32 to vector<4x1x64xf32>
    %28 = arith.maximumf %26, %27 : vector<4x1x64xf32>
    %29 = math.rsqrt %28 : vector<4x1x64xf32>
    %30 = vector.broadcast %29 : vector<4x1x64xf32> to vector<4x8x64xf32>
    %31 = arith.mulf %11, %30 : vector<4x8x64xf32>
    "tpu.trace_start"() <{level = 10 : i32, message = "gdn,gdm->gnm"}> : () -> ()
    %cst_11 = arith.constant dense<0.000000e+00> : vector<4x64x64xf32>
    %32 = tpu.matmul %23, %31, %cst_11 {dimension_numbers = #tpu.dot_dimension_numbers<[1], [1], [2], [2], [0, 0, 0, 2, 1, 2], [0], [0]>} : vector<4x8x64xf32>, vector<4x8x64xf32>, vector<4x64x64xf32> -> vector<4x64x64xf32>
    "tpu.trace_stop"() : () -> ()
    %33 = math.exp %32 : vector<4x64x64xf32>
    %cst_12 = arith.constant dense<0.000000e+00> : vector<4x64xf32>
    %34 = vector.multi_reduction <add>, %33, %cst_12 [2] : vector<4x64x64xf32> to vector<4x64xf32>
    %35 = vector.shape_cast %34 : vector<4x64xf32> to vector<4x64x1xf32>
    %cst_13 = arith.constant 1.000000e+00 : f32
    %36 = vector.broadcast %cst_13 : f32 to vector<4x64x1xf32>
    %37 = arith.divf %36, %35 : vector<4x64x1xf32>
    %38 = vector.broadcast %37 : vector<4x64x1xf32> to vector<4x64x64xf32>
    %39 = arith.mulf %33, %38 : vector<4x64x64xf32>
    %cst_14 = arith.constant 9.99999997E-7 : f32
    %cst_15 = arith.constant 1.000000e+00 : f32
    %40 = vector.broadcast %cst_14 : f32 to vector<4x64x64xf32>
    %41 = arith.maximumf %40, %39 : vector<4x64x64xf32>
    %42 = vector.broadcast %cst_15 : f32 to vector<4x64x64xf32>
    %43 = arith.minimumf %42, %41 : vector<4x64x64xf32>
    "tpu.trace_start"() <{level = 10 : i32, message = "gdm,gnm->gdn"}> : () -> ()
    %cst_16 = arith.constant dense<0.000000e+00> : vector<4x8x64xf32>
    %44 = tpu.matmul %13, %43, %cst_16 {dimension_numbers = #tpu.dot_dimension_numbers<[2], [2], [1], [1], [0, 0, 0, 1, 1, 1], [0], [0]>} : vector<4x8x64xf32>, vector<4x64x64xf32>, vector<4x8x64xf32> -> vector<4x8x64xf32>
    "tpu.trace_stop"() : () -> ()
    %45 = vector.shape_cast %44 : vector<4x8x64xf32> to vector<1x32x64xf32>
    %c0_17 = arith.constant 0 : index
    %c0_18 = arith.constant 0 : index
    %46 = vector.load %arg4[%c0_17, %c0_18] : memref<32x32xf32, #tpu.memory_space<vmem>>, vector<32x32xf32>
    %47 = vector.shape_cast %46 : vector<32x32xf32> to vector<1x32x32xf32>
    "tpu.trace_start"() <{level = 10 : i32, message = "boc,bcn->bon"}> : () -> ()
    %cst_19 = arith.constant dense<0.000000e+00> : vector<1x32x64xf32>
    %48 = tpu.matmul %47, %45, %cst_19 {dimension_numbers = #tpu.dot_dimension_numbers<[2], [1], [1], [2], [0, 0, 0, 1, 1, 2], [0], [0]>} : vector<1x32x32xf32>, vector<1x32x64xf32>, vector<1x32x64xf32> -> vector<1x32x64xf32>
    "tpu.trace_stop"() : () -> ()
    %c0_20 = arith.constant 0 : index
    %c0_21 = arith.constant 0 : index
    %49 = vector.load %arg5[%c0_20, %c0_21] : memref<32x1xf32, #tpu.memory_space<vmem>>, vector<32x1xf32>
    %50 = vector.shape_cast %49 : vector<32x1xf32> to vector<1x32x1xf32>
    %51 = vector.broadcast %50 : vector<1x32x1xf32> to vector<1x32x64xf32>
    %52 = arith.addf %48, %51 : vector<1x32x64xf32>
    %c0_22 = arith.constant 0 : index
    %c0_23 = arith.constant 0 : index
    %c0_24 = arith.constant 0 : index
    %53 = vector.load %arg6[%c0_22, %c0_23, %c0_24] : memref<1x32x64xf32, #tpu.memory_space<vmem>>, vector<1x32x64xf32>
    tpu.vector_store %arg6[%c0_22, %c0_23, %c0_24], %52 {strides = array<i32>} : memref<1x32x64xf32, #tpu.memory_space<vmem>>, vector<1x32x64xf32>,
    return
  }
  func.func @transform_0(%arg0: i32) -> (i32, i32, i32) {
    %c0_i32 = arith.constant 0 : i32
    %c0_i32_0 = arith.constant 0 : i32
    %c0_i32_1 = arith.constant 0 : i32
    return %arg0, %c0_i32, %c0_i32_0 : i32, i32, i32
  }
  func.func @transform_1(%arg0: i32) -> (i32, i32) {
    %c0_i32 = arith.constant 0 : i32
    %c0_i32_0 = arith.constant 0 : i32
    %c0_i32_1 = arith.constant 0 : i32
    return %c0_i32, %c0_i32_0 : i32, i32
  }
  func.func @transform_2(%arg0: i32) -> (i32, i32) {
    %c0_i32 = arith.constant 0 : i32
    %c0_i32_0 = arith.constant 0 : i32
    %c0_i32_1 = arith.constant 0 : i32
    return %c0_i32, %c0_i32_0 : i32, i32
  }
  func.func @transform_3(%arg0: i32) -> (i32, i32) {
    %c0_i32 = arith.constant 0 : i32
    %c0_i32_0 = arith.constant 0 : i32
    %c0_i32_1 = arith.constant 0 : i32
    return %c0_i32, %c0_i32_0 : i32, i32
  }
  func.func @transform_4(%arg0: i32) -> (i32, i32) {
    %c0_i32 = arith.constant 0 : i32
    %c0_i32_0 = arith.constant 0 : i32
    %c0_i32_1 = arith.constant 0 : i32
    return %c0_i32, %c0_i32_0 : i32, i32
  }
  func.func @transform_5(%arg0: i32) -> (i32, i32, i32) {
    %c0_i32 = arith.constant 0 : i32
    %c0_i32_0 = arith.constant 0 : i32
    %c0_i32_1 = arith.constant 0 : i32
    return %arg0, %c0_i32, %c0_i32_0 : i32, i32, i32
  }
}

</mosaic_0001>

<bundles_post_ra>
// kernel: tpu_custom_call.1
= control target key start
LH: loop header
LB: loop body
LE: loop exit
PB: predicated region body
PF: predicated region fallthrough
CT: control target
= control target key end

     0   :  { %10 = vsyncpa [#allocation3], 0  ;;  %s3441_s0 = inlined_call_operand.vmem [shape: f32[2,32,64], index: 0, kind: input, shape index: {}]   ;;  %s3442_s1 = inlined_call_operand.vmem [shape: f32[96,32], index: 1, kind: input, shape index: {}]   ;;  %s3443_s2 = inlined_call_operand.vmem [shape: f32[96,1], index: 2, kind: input, shape index: {}]   ;;  %s3444_s3 = inlined_call_operand.vmem [shape: f32[32,32], index: 3, kind: input, shape index: {}]   ;;  %s3445_s4 = inlined_call_operand.vmem [shape: f32[32,1], index: 4, kind: input, shape index: {}]   ;;  %s3446_s5 = inlined_call_operand.hbm [shape: f32[2,32,64], index: 5, kind: output, shape index: {}]  }
   0x1   :  { %12 = vsyncpa [#allocation3 + $0x1], 0  ;;  %s2866_s18 = smov 0   ;;  %s2868_s19 = smov 0  }
   0x2   :  { %s2870_s20 = smov 0   ;;  %s2872_s21 = smov 0  }
   0x3 LB: > { %s2887_s22 = sadd.s32 4294967295, %s2827_s21   ;;  %s2124_s23 = sadd.s32 4294967294, %s2827_s21   ;;  %s2827_s21 = sphi %s2872_s21, %s3454_s21   ;;  %s2823_s20 = sphi %s2870_s20, %s3453_s20   ;;  %s2819_s19 = sphi %s2868_s19, %s3452_s19   ;;  %s2815_s18 = sphi %s2866_s18, %s3451_s18  }
   0x4   : > { %s2891_s24 = sadd.s32 1, %s2827_s21   ;;  %s135_s25 = sadd.s32 1, %s2823_s20 }
   0x5   : > { %s132_s26 = ssub.s32 %s2827_s21, %s2891_s24  ;;  %p145_p0 = scmp.ne.s32.totalorder %s2823_s20, %s2819_s19 }
   0x6   : > { %p133_p1 = scmp.eq.s32.totalorder %s132_s26, 0  ;;  %p146_p2 = scmp.eq.s32.totalorder %s2887_s22, 1 }
   0x7   : > { %p151_p3 = scmp.ne.s32.totalorder %s2819_s19, %s2815_s18  ;;  %p152_p4 = scmp.eq.s32.totalorder %s2124_s23, 1 }
   0x8   : > { %s2902_s27 = scalar_select %p133_p1, %s2823_s20, %s135_s25  }
   0x9   : > { %p2904_p5 = por %p146_p2, %p145_p0  ;;  %p2908_p6 = por %p152_p4, %p151_p3 }
   0xa   : > { %p2127_p7 = scmp.ge.s32.totalorder %s2827_s21, 1  ;;  %p190_p8 = scmp.lt.s32.totalorder %s2827_s21, 3 }
   0xc   : > { %p191_p9 = pnand %p2127_p7, %p190_p8 }
   0xd   : > { %p218_p10 = scmp.lt.s32.totalorder (!%p191_p9), %s2887_s22, 1  ;;  %v227_v0 = vld [vmem:[%s3442_s1] sm:$0xff] (!%p191_p9)  ;;  %vm311_vm0 = vcmask (!%p191_p9), 261120   ;;  %v2829_v1 = vmov (!%p191_p9), 0   ;;  %v240_v4 = vld [vmem:[%s3443_s2 + $0x8] sm:$0xff] (!%p191_p9)  ;;  %v241_v5 = vld [vmem:[%s3443_s2 + $0x10] sm:$0xff] (!%p191_p9) }
   0xe   : > { %194 = sbr.rel (%p191_p9) target bundleno = 1399 (0x577), region = 40  ;;  %2326 = vmatprep.mubr.msk.f32.mxu0 (!%p191_p9), %vm311_vm0, %v227_v0  ;;  %2619 = vset.pattern.permute.xlu0 (!%p191_p9), %v2829_v1  ;;  %v239_v2 = vld [vmem:[%s3443_s2] sm:$0xff] (!%p191_p9)  ;;  %v242_v12 = vld [vmem:[%s3443_s2 + $0x18] sm:$0xff] (!%p191_p9)  ;;  %v244_v13 = vld [vmem:[%s3443_s2 + $0x28] sm:$0xff] (!%p191_p9)  ;;  %vm477_vm1 = vcmask (!%p191_p9), 523264   ;;  %vm598_vm2 = vcmask (!%p191_p9), 64512  }
   0xf   : > { %2620 = vset.pattern.permute.xlu1 (!%p191_p9), %v2829_v1  ;;  %253 = vperm.xlu0 (!%p191_p9), %2619, %v239_v2   ;;  %v243_v3 = vld [vmem:[%s3443_s2 + $0x20] sm:$0xff] (!%p191_p9)  ;;  %v245_v14 = vld [vmem:[%s3443_s2 + $0x30] sm:$0xff] (!%p191_p9)  ;;  %v246_v15 = vld [vmem:[%s3443_s2 + $0x38] sm:$0xff] (!%p191_p9)  ;;  %vm2831_vm3 = vmmov (!%p191_p9), 0   ;;  %s215_s10 = sand.u32 (!%p191_p9), 1, %s2819_s19   ;;  %s2221_s14 = sshll.u32 (!%p191_p9), %s2887_s22, 9 }
  0x10   : > { %273 = vperm.xlu1 (!%p191_p9), %2620, %v243_v3   ;;  %v228_v16 = vld [vmem:[%s3442_s1 + $0x8] sm:$0xff] (!%p191_p9)  ;;  %v229_v17 = vld [vmem:[%s3442_s1 + $0x10] sm:$0xff] (!%p191_p9)  ;;  %v230_v18 = vld [vmem:[%s3442_s1 + $0x18] sm:$0xff] (!%p191_p9)  ;;  %s2128_s11 = sshll.u32 (!%p191_p9), %s215_s10, 5  ;;  %s2833_s25 = smov (!%p191_p9), [#allocation2]  }
  0x11   : > { %v231_v19 = vld [vmem:[%s3442_s1 + $0x20] sm:$0xff] (!%p191_p9)  ;;  %v232_v20 = vld [vmem:[%s3442_s1 + $0x28] sm:$0xff] (!%p191_p9)  ;;  %v233_v21 = vld [vmem:[%s3442_s1 + $0x30] sm:$0xff] (!%p191_p9)  ;;  %s2769_s26 = sshll.u32 (!%p191_p9), %s2833_s25, 4  ;;  %s2770_s26 = int_to_ptr.vmem [resolvable:$false] %s2769_s26 }
  0x12   : > { %v234_v22 = vld [vmem:[%s3442_s1 + $0x38] sm:$0xff] (!%p191_p9)  ;;  %vm3270_vm4 = vmpackc.low (!%p191_p9), %vm477_vm1, %vm477_vm1  ;;  %s2771_s30 = scalar_lea.vmem (!%p191_p9), %s2770_s26, 1024 }
  0x13   : > { %258 = vperm.xlu0 (!%p191_p9), %2619, %v240_v4  }
  0x14   : > { %263 = vperm.xlu1 (!%p191_p9), %2620, %v241_v5  }
  0x15   : > { %s219_s7 = scalar_select %p218_p10, %s2887_s22, 1 }
  0x16   : > { %s3400_s22 = scalar_lea.sflag [#allocation3], %s215_s10 }
  0x17   : > { %s2220_s12 = sshll.u32 %s219_s7, 5  ;;  %268 = vperm.xlu0 %2619, %v242_v12  }
  0x18   : > { %s222_s17 = scalar_lea.vmem %s3441_s0, %s2220_s12  ;;  %278 = vperm.xlu1 %2620, %v244_v13   ;;  %s217_s12 = scalar_lea.vmem [#allocation2], %s2128_s11 }
  0x19   : > { %v223_v6 = vld [vmem:[%s222_s17] sm:$0xff]  ;;  %v224_v7 = vld [vmem:[%s222_s17 + $0x8] sm:$0xff]  ;;  %v225_v8 = vld [vmem:[%s222_s17 + $0x10] sm:$0xff]  ;;  %s2062_s13 = sshll.u32 %s217_s12, 4  ;;  %s3389_s13 = int_to_ptr.vmem [resolvable:$true] %s2062_s13 }
  0x1a   : > { %v2490_v9 = vpack.c.bf16 %v224_v7, %v223_v6  ;;  %v226_v10 = vld [vmem:[%s222_s17 + $0x18] sm:$0xff]  ;;  %s3394_s17 = scalar_lea.hbm %s3446_s5, %s2221_s14  ;;  %s2765_s23 = scalar_lea.vmem %s3389_s13, 512 }
  0x1b   : > { %v2494_v11 = vpack.c.bf16 %v226_v10, %v225_v8  ;;  %283 = vperm.xlu0 %2619, %v245_v14   ;;  %p2766_p11 = scmp.ne.s32.totalorder %s3389_s13, %s2765_s23  ;;  %p2772_p0 = scmp.lt.s32.totalorder %s3389_s13, %s2770_s26 }
  0x1c   : > { %2491 = vmatprep.subr.bf16.mxu0 %v2490_v9  ;;  %288 = vperm.xlu1 %2620, %v246_v15   ;;  %p2773_p1 = scmp.lt.s32.totalorder %s2771_s30, %s2765_s23 }
  0x1d   : > { %2493 = vmatpush3.bf16.msra.mxu0 %v2490_v9  ;;  %p2767_p12 = pnand %p2766_p11, %p2904_p5 }
  0x1e   : > { %2495 = vmatprep.subr.bf16.mxu0 %v2494_v11  ;;  %p2774_p2 = por %p2773_p1, %p2772_p0 }
  0x1f   : > { %p2768_p13 = pneg %p2767_p12 }
  0x21   : > { %2497 = vmatpush3.bf16.msra.mxu0 %v2494_v11  ;;  %p2775_p3 = pnand %p2774_p2, %p2768_p13 }
  0x24   : > { %2327 = vmatmul.mubr.msk.f32.vlgmr.msra.gmra.mrb[0].mxu0 %vm311_vm0, %v228_v16 }
  0x25   : > { %2329 = vmatprep.mubr.msk.f32.mxu0 %vm311_vm0, %v229_v17 }
  0x28   : > { %2330 = vmatmul.mubr.msk.f32.gmra.mrb[2].mxu0 %vm311_vm0, %v230_v18 }
  0x29   : > { %2332 = vmatprep.mubr.msk.f32.mxu0 %vm311_vm0, %v231_v19 }
  0x2c   : > { %2333 = vmatmul.mubr.msk.f32.gmra.mrb[4].mxu0 %vm311_vm0, %v232_v20 }
  0x2d   : > { %2335 = vmatprep.mubr.msk.f32.mxu0 %vm311_vm0, %v233_v21 }
  0x30   : > { %2336 = vmatmul.mubr.msk.f32.gmra.mrb[6].mxu0 %vm311_vm0, %v234_v22 }
  0x8e   : > { %v254_v23 = vpop.permute.xlu0 %253 }
  0x8f   : > { %v274_v24 = vpop.permute.xlu1 %273 }
  0x92   : > { %v259_v25 = vpop.permute.xlu0 %258 }
  0x93   : > { %v264_v27 = vpop.permute.xlu1 %263 }
  0x96   : > { %v269_v34 = vpop.permute.xlu0 %268 }
  0x97   : > { %v279_v40 = vpop.permute.xlu1 %278 }
  0x9a   : > { %v284_v0 = vpop.permute.xlu0 %283 }
  0xf7   : > { %v2328_v26 = vpop.f32.mrb[0].mxu0 }
  0xf8   : > { %v2975_v28 = vadd.f32 %v2328_v26, %v259_v25  ;;  %v414_v29 = vpop.f32.mrb[1].mxu0 }
  0xf9   : > { %v2977_v30 = vadd.f32 %v414_v29, %v254_v23 }
  0xfa   : > { %v474_v31 = vmul.f32 %v2975_v28, %v2975_v28 }
  0xfb   : > { %v473_v32 = vmul.f32 %v2977_v30, %v2977_v30  ;;  %v2331_v33 = vpop.f32.mrb[2].mxu0 }
  0xfc   : > { %v485_v35 = vsel %vm477_vm1, %v474_v31, 0.0  ;;  %v424_v36 = vpop.f32.mrb[3].mxu0  ;;  %v2985_v39 = vadd.f32 %v2331_v33, %v269_v34 }
  0xfd   : > { %v486_v37 = vrot.slane %v485_v35, 4  ;;  %v478_v38 = vsel %vm477_vm1, %v473_v32, 0.0  ;;  %v2987_v42 = vadd.f32 %v424_v36, %v264_v27 }
  0xfe   : > { %v479_v41 = vrot.slane %v478_v38, 4  ;;  %v476_v49 = vmul.f32 %v2985_v39, %v2985_v39 }
  0xff   : > { %v487_v43 = vadd.f32 %v486_v37, %v485_v35  ;;  %v2334_v44 = vpop.f32.mrb[4].mxu0  ;;  %v475_v52 = vmul.f32 %v2987_v42, %v2987_v42 }
 0x100   : > { %v480_v45 = vadd.f32 %v479_v41, %v478_v38  ;;  %v2989_v46 = vadd.f32 %v2334_v44, %v279_v40  ;;  %v434_v47 = vpop.f32.mrb[5].mxu0  ;;  %v499_v61 = vsel %vm477_vm1, %v476_v49, 0.0 }
 0x101   : > { %v488_v48 = vrot.slane %v487_v43, 2  ;;  %v2993_v50 = vadd.f32 %v434_v47, %v274_v24  ;;  %v492_v2 = vsel %vm477_vm1, %v475_v52, 0.0  ;;  %v500_v8 = vrot.slane %v499_v61, 4 }
 0x102   : > { %v481_v51 = vrot.slane %v480_v45, 2  ;;  %v523_v53 = vmul.f32 %v2989_v46, %v2989_v46  ;;  %v493_v11 = vrot.slane %v492_v2, 4 }
 0x103   : > { %v489_v54 = vadd.f32 %v488_v48, %v487_v43  ;;  %v522_v55 = vmul.f32 %v2993_v50, %v2993_v50  ;;  %v3001_v56 = vpop.f32.mrb[6].mxu0  ;;  %v501_v17 = vadd.f32 %v500_v8, %v499_v61 }
 0x104   : > { %v482_v57 = vadd.f32 %v481_v51, %v480_v45  ;;  %v533_v58 = vsel %vm477_vm1, %v523_v53, 0.0  ;;  %v444_v59 = vpop.f32.mrb[7].mxu0  ;;  %v494_v20 = vadd.f32 %v493_v11, %v492_v2 }
 0x105   : > { %v490_v60 = vrot.slane %v489_v54, 1  ;;  %v534_v62 = vrot.slane %v533_v58, 4  ;;  %v526_v63 = vsel %vm477_vm1, %v522_v55, 0.0  ;;  %v445_v6 = vadd.f32 %v444_v59, %v284_v0 }
 0x106   : > { %v483_v1 = vrot.slane %v482_v57, 1  ;;  %v527_v3 = vrot.slane %v526_v63, 4  ;;  %v502_v26 = vrot.slane %v501_v17, 2  ;;  %v495_v29 = vrot.slane %v494_v20, 2 }
 0x107   : > { %v491_v4 = vadd.f32 %v490_v60, %v489_v54  ;;  %v535_v5 = vadd.f32 %v534_v62, %v533_v58  ;;  %v524_v15 = vmul.f32 %v445_v6, %v445_v6 }
 0x108   : > { %v484_v7 = vadd.f32 %v483_v1, %v482_v57  ;;  %v528_v9 = vadd.f32 %v527_v3, %v526_v63  ;;  %v503_v35 = vadd.f32 %v502_v26, %v501_v17  ;;  %v496_v37 = vadd.f32 %v495_v29, %v494_v20  ;;  %v237_v3 = vld [vmem:[%s3442_s1 + $0x50] sm:$0xff] }
 0x109   : > { %v507_v10 = vmax.f32 %v491_v4, 1e-24  ;;  %v536_v12 = vrot.slane %v535_v5, 2  ;;  %v540_v19 = vsel %vm477_vm1, %v524_v15, 0.0  ;;  %v238_v4 = vld [vmem:[%s3442_s1 + $0x58] sm:$0xff] }
 0x10a   : > { %v506_v13 = vmax.f32 %v484_v7, 1e-24  ;;  %v529_v14 = vrot.slane %v528_v9, 2  ;;  %v541_v22 = vrot.slane %v540_v19, 4  ;;  %v504_v47 = vrot.slane %v503_v35, 1 }
 0x10b   : > { %2621 = vrsqrt.f32 %v507_v10  ;;  %v537_v16 = vadd.f32 %v536_v12, %v535_v5  ;;  %v497_v49 = vrot.slane %v496_v37, 1 }
 0x10c   : > { %2623 = vrsqrt.f32 %v506_v13  ;;  %v530_v18 = vadd.f32 %v529_v14, %v528_v9  ;;  %v542_v25 = vadd.f32 %v541_v22, %v540_v19  ;;  %v505_v52 = vadd.f32 %v504_v47, %v503_v35 }
 0x10d   : > { %v538_v21 = vrot.slane %v537_v16, 1  ;;  %v498_v54 = vadd.f32 %v497_v49, %v496_v37 }
 0x10e   : > { %v531_v23 = vrot.slane %v530_v18, 1  ;;  %v543_v32 = vrot.slane %v542_v25, 2  ;;  %v509_v58 = vmax.f32 %v505_v52, 1e-24 }
 0x10f   : > { %v539_v24 = vadd.f32 %v538_v21, %v537_v16  ;;  %v508_v59 = vmax.f32 %v498_v54, 1e-24 }
 0x110   : > { %v532_v27 = vadd.f32 %v531_v23, %v530_v18  ;;  %v544_v34 = vadd.f32 %v543_v32, %v542_v25 }
 0x111   : > { %v555_v31 = vmax.f32 %v539_v24, 1e-24 }
 0x112   : > { %v554_v33 = vmax.f32 %v532_v27, 1e-24  ;;  %v545_v38 = vrot.slane %v544_v34, 1 }
 0x113   : > { %2625 = vrsqrt.f32 %v555_v31 }
 0x114   : > { %2627 = vrsqrt.f32 %v554_v33  ;;  %v546_v44 = vadd.f32 %v545_v38, %v544_v34 }
 0x115   : > { %v2622_v36 = vpop.eup %2621 }
 0x116   : > { %v2624_v40 = vpop.eup %2623  ;;  %v515_v41 = vmul.f32 0.35355338, %v2622_v36  ;;  %v556_v51 = vmax.f32 %v546_v44, 1e-24 }
 0x117   : > { %v514_v43 = vmul.f32 0.35355338, %v2624_v40 }
 0x118   : > { %v519_v45 = vmul.f32 %v515_v41, %v2975_v28  ;;  %2629 = vrsqrt.f32 %v556_v51 }
 0x119   : > { %v518_v48 = vmul.f32 %v514_v43, %v2977_v30  ;;  %2631 = vrsqrt.f32 %v509_v58 }
 0x11a   : > { %728 = vxpose.xlu1.b32.start.end [1/1] (short) (narrow) %v519_v45, 64  ;;  %2633 = vrsqrt.f32 %v508_v59 }
 0x11b   : > { %566 = vxpose.xlu0.b32.start.end [1/1] (short) (narrow) %v518_v48, 64 }
 0x11d   : > { %v2626_v53 = vpop.eup %2625 }
 0x11e   : > { %v2628_v55 = vpop.eup %2627  ;;  %v563_v60 = vmul.f32 %v2626_v53, %v2989_v46  ;;  %v236_v46 = vld [vmem:[%s3442_s1 + $0x48] sm:$0xff] }
 0x11f   : > { %v562_v57 = vmul.f32 %v2628_v55, %v2993_v50  ;;  %v235_v50 = vld [vmem:[%s3442_s1 + $0x40] sm:$0xff] }
 0x120   : > { %2338 = vmatprep.mubr.msk.f32.mxu0 %vm311_vm0, %v235_v50 }
 0x121   : > { %2344 = vmatprep.subr.mxu1 %v562_v57  ;;  %2339 = vmatmul.mubr.msk.f32.gmra.mrb[8].mxu0 %vm311_vm0, %v236_v46 }
 0x122   : > { %2345 = vmatpush3.msra.mxu1 %v562_v57  ;;  %v2630_v28 = vpop.eup %2629  ;;  %2341 = vmatprep.mubr.msk.f32.mxu0 %vm311_vm0, %v237_v3 }
 0x123   : > { %2358 = vmatprep.subr.mxu1 %v563_v60  ;;  %v564_v30 = vmul.f32 %v2630_v28, %v445_v6  ;;  %v2632_v61 = vpop.eup %2631 }
 0x124   : > { %v2634_v62 = vpop.eup %2633  ;;  %v517_v63 = vmul.f32 0.35355338, %v2632_v61 }
 0x125   : > { %2372 = vmatprep.subr.mxu0 %v564_v30  ;;  %v516_v0 = vmul.f32 0.35355338, %v2634_v62  ;;  %2342 = vmatmul.mubr.msk.f32.gmra.mrb[10].mxu0 %vm311_vm0, %v238_v4 }
 0x126   : > { %2373 = vmatpush3.msra.mxu0 %v564_v30  ;;  %v521_v1 = vmul.f32 %v517_v63, %v2985_v39  ;;  %v289_v39 = vpop.permute.xlu1 %288 }
 0x127   : > { %v520_v2 = vmul.f32 %v516_v0, %v2987_v42  ;;  %v450_v5 = vadd.f32 %v3001_v56, %v289_v39 }
 0x129   : > { %v525_v42 = vmul.f32 %v450_v5, %v450_v5 }
 0x12b   : > { %v547_v6 = vsel %vm477_vm1, %v525_v42, 0.0 }
 0x12c   : > { %v548_v7 = vrot.slane %v547_v6, 4 }
 0x12e   : > { %v549_v8 = vadd.f32 %v548_v7, %v547_v6 }
 0x130   : > { %v550_v9 = vrot.slane %v549_v8, 2 }
 0x132   : > { %v551_v10 = vadd.f32 %v550_v9, %v549_v8 }
 0x134   : > { %v552_v11 = vrot.slane %v551_v10, 1 }
 0x136   : > { %v553_v12 = vadd.f32 %v552_v11, %v551_v10 }
 0x137   : > { %1050 = vxpose.xlu1.b32.start.end [1/1] (short) (narrow) %v521_v1, 64 }
 0x138   : > { %889 = vxpose.xlu0.b32.start.end [1/1] (short) (narrow) %v520_v2, 64  ;;  %v557_v13 = vmax.f32 %v553_v12, 1e-24 }
 0x13a   : > { %2635 = vrsqrt.f32 %v557_v13 }
 0x144   : > { %v2636_v16 = vpop.eup %2635 }
 0x145   : > { %v565_v56 = vmul.f32 %v2636_v16, %v450_v5 }
 0x19a   : > { %v744_v14 = vpop.trf.xlu1 }
 0x19b   : > { %v582_v15 = vpop.trf.xlu0 }
 0x19c   : > { %2346 = vmatprep.mubr.msk.f32.mxu1 %vm598_vm2, %v582_v15 }
 0x19e   : > { %v745_v17 = vpop.trf.xlu1 }
 0x19f   : > { %v583_v18 = vpop.trf.xlu0 }
 0x1a0   : > { %2347 = vmatmul.mubr.msk.f32.vlgmr.msra.gmra.mrb[0].mxu1 %vm598_vm2, %v583_v18 }
 0x1a1   : > { %2359 = vmatpush3.msra.mxu1 %v563_v60 }
 0x1a2   : > { %2386 = vmatprep.subr.mxu1 %v565_v56  ;;  %v746_v19 = vpop.trf.xlu1 }
 0x1a3   : > { %v584_v20 = vpop.trf.xlu0 }
 0x1a4   : > { %2349 = vmatprep.mubr.msk.f32.mxu1 %vm598_vm2, %v584_v20 }
 0x1a6   : > { %v747_v21 = vpop.trf.xlu1 }
 0x1a7   : > { %v585_v22 = vpop.trf.xlu0 }
 0x1a8   : > { %2350 = vmatmul.mubr.msk.f32.gmra.mrb[2].mxu1 %vm598_vm2, %v585_v22 }
 0x1aa   : > { %v748_v23 = vpop.trf.xlu1 }
 0x1ab   : > { %v586_v24 = vpop.trf.xlu0 }
 0x1ac   : > { %2352 = vmatprep.mubr.msk.f32.mxu1 %vm598_vm2, %v586_v24 }
 0x1ae   : > { %v749_v25 = vpop.trf.xlu1 }
 0x1af   : > { %v587_v26 = vpop.trf.xlu0 }
 0x1b0   : > { %2353 = vmatmul.mubr.msk.f32.gmra.mrb[4].mxu1 %vm598_vm2, %v587_v26 }
 0x1b2   : > { %v750_v27 = vpop.trf.xlu1 }
 0x1b3   : > { %v588_v29 = vpop.trf.xlu0 }
 0x1b4   : > { %2355 = vmatprep.mubr.msk.f32.mxu1 %vm598_vm2, %v588_v29  ;;  %v2830_v29 = vmov 0.0|0.0  }
 0x1b5   : > { %2498 = vmatprep.subr.bf16.mxu0 %v2830_v29 }
 0x1b6   : > { %v751_v31 = vpop.trf.xlu1 }
 0x1b7   : > { %v589_v32 = vpop.trf.xlu0 }
 0x1b8   : > { %2356 = vmatmul.mubr.msk.f32.gmra.mrb[6].mxu1 %vm598_vm2, %v589_v32 }
 0x1b9   : > { %2360 = vmatprep.mubr.msk.f32.mxu1 %vm598_vm2, %v744_v14 }
 0x1ba   : > { %v1066_v33 = vpop.trf.xlu1 }
 0x1bb   : > { %v905_v34 = vpop.trf.xlu0 }
 0x1bc   : > { %2361 = vmatmul.mubr.msk.f32.vlgmr.msra.gmra.mrb[8].mxu1 %vm598_vm2, %v745_v17  ;;  %2374 = vmatprep.mubr.msk.f32.mxu0 %vm598_vm2, %v905_v34 }
 0x1bd   : > { %2387 = vmatpush3.msra.mxu1 %v565_v56  ;;  %2363 = vmatprep.mubr.msk.f32.mxu1 %vm598_vm2, %v746_v19 }
 0x1be   : > { %v1067_v35 = vpop.trf.xlu1  ;;  %2514 = vmatprep.subr.bf16.mxu1 %v2830_v29 }
 0x1bf   : > { %v906_v36 = vpop.trf.xlu0 }
 0x1c0   : > { %2375 = vmatmul.mubr.msk.f32.vlgmr.msra.gmra.mrb[12].mxu0 %vm598_vm2, %v906_v36  ;;  %2364 = vmatmul.mubr.msk.f32.gmra.mrb[10].mxu1 %vm598_vm2, %v747_v21 }
 0x1c1   : > { %2366 = vmatprep.mubr.msk.f32.mxu1 %vm598_vm2, %v748_v23 }
 0x1c2   : > { %v1068_v37 = vpop.trf.xlu1 }
 0x1c3   : > { %v907_v38 = vpop.trf.xlu0 }
 0x1c4   : > { %2377 = vmatprep.mubr.msk.f32.mxu0 %vm598_vm2, %v907_v38  ;;  %2367 = vmatmul.mubr.msk.f32.gmra.mrb[12].mxu1 %vm598_vm2, %v749_v25 }
 0x1c5   : > { %2369 = vmatprep.mubr.msk.f32.mxu1 %vm598_vm2, %v750_v27 }
 0x1c6   : > { %v1069_v40 = vpop.trf.xlu1 }
 0x1c7   : > { %v908_v41 = vpop.trf.xlu0 }
 0x1c8   : > { %2378 = vmatmul.mubr.msk.f32.gmra.mrb[14].mxu0 %vm598_vm2, %v908_v41  ;;  %2370 = vmatmul.mubr.msk.f32.gmra.mrb[14].mxu1 %vm598_vm2, %v751_v31 }
 0x1c9   : > { %2388 = vmatprep.mubr.msk.f32.mxu1 %vm598_vm2, %v1066_v33 }
 0x1ca   : > { %v1070_v43 = vpop.trf.xlu1 }
 0x1cb   : > { %v909_v44 = vpop.trf.xlu0 }
 0x1cc   : > { %2380 = vmatprep.mubr.msk.f32.mxu0 %vm598_vm2, %v909_v44  ;;  %2389 = vmatmul.mubr.msk.f32.vlgmr.msra.gmra.mrb[16].mxu1 %vm598_vm2, %v1067_v35 }
 0x1cd   : > { %2391 = vmatprep.mubr.msk.f32.mxu1 %vm598_vm2, %v1068_v37 }
 0x1ce   : > { %v1071_v45 = vpop.trf.xlu1 }
 0x1cf   : > { %v910_v47 = vpop.trf.xlu0 }
 0x1d0   : > { %2381 = vmatmul.mubr.msk.f32.gmra.mrb[16].mxu0 %vm598_vm2, %v910_v47  ;;  %2392 = vmatmul.mubr.msk.f32.gmra.mrb[18].mxu1 %vm598_vm2, %v1069_v40 }
 0x1d1   : > { %2394 = vmatprep.mubr.msk.f32.mxu1 %vm598_vm2, %v1070_v43 }
 0x1d2   : > { %v1072_v48 = vpop.trf.xlu1 }
 0x1d3   : > { %v911_v49 = vpop.trf.xlu0 }
 0x1d4   : > { %2383 = vmatprep.mubr.msk.f32.mxu0 %vm598_vm2, %v911_v49  ;;  %2395 = vmatmul.mubr.msk.f32.gmra.mrb[20].mxu1 %vm598_vm2, %v1071_v45 }
 0x1d5   : > { %2397 = vmatprep.mubr.msk.f32.mxu1 %vm598_vm2, %v1072_v48 }
 0x1d6   : > { %v1073_v51 = vpop.trf.xlu1 }
 0x1d7   : > { %v912_v52 = vpop.trf.xlu0 }
 0x1d8   : > { %2384 = vmatmul.mubr.msk.f32.gmra.mrb[18].mxu0 %vm598_vm2, %v912_v52  ;;  %2398 = vmatmul.mubr.msk.f32.gmra.mrb[22].mxu1 %vm598_vm2, %v1073_v51 }
 0x1f4   : > { %v3064_v53 = vpop.f32.mrb[8].mxu0 }
 0x1f5   : > { %v3066_v54 = vpop.f32.mrb[9].mxu0 }
 0x1f8   : > { %v3068_v55 = vpop.f32.mrb[10].mxu0 }
 0x1f9   : > { %v3070_v57 = vpop.f32.mrb[11].mxu0 }
 0x273   : > { %v2348_v58 = vpop.f32.mrb[0].mxu1 }
 0x274   : > { %v1213_v59 = vmul.f32 1.442695, %v2348_v58  ;;  %v689_v60 = vpop.f32.mrb[1].mxu1 }
 0x275   : > { %v1211_v28 = vmul.f32 1.442695, %v689_v60 }
 0x276   : > { %2637 = vpow2.f32 %v1213_v59 }
 0x277   : > { %2639 = vpow2.f32 %v1211_v28 }
 0x27b   : > { %v2351_v30 = vpop.f32.mrb[2].mxu1 }
 0x27c   : > { %v699_v61 = vpop.f32.mrb[3].mxu1  ;;  %v1217_v6 = vmul.f32 1.442695, %v2351_v30 }
 0x27d   : > { %v1215_v10 = vmul.f32 1.442695, %v699_v61 }
 0x280   : > { %v3072_v62 = vpop.eup %2637 }
 0x281   : > { %v3074_v63 = vpop.eup %2639  ;;  %v1278_v0 = vsel %vm477_vm1, %v3072_v62, 0.0 }
 0x282   : > { %1279 = vadd.xlane.f32.xlu1 %v1278_v0  ;;  %v1275_v50 = vsel %vm477_vm1, %v3074_v63, 0.0 }
 0x283   : > { %1276 = vadd.xlane.f32.xlu0 %v1275_v50  ;;  %v2354_v46 = vpop.f32.mrb[4].mxu1 }
 0x284   : > { %v709_v1 = vpop.f32.mrb[5].mxu1  ;;  %v1221_v16 = vmul.f32 1.442695, %v2354_v46 }
 0x285   : > { %v1219_v19 = vmul.f32 1.442695, %v709_v1 }
 0x28b   : > { %v2357_v2 = vpop.f32.mrb[6].mxu1 }
 0x28c   : > { %v719_v3 = vpop.f32.mrb[7].mxu1  ;;  %v1225_v34 = vmul.f32 1.442695, %v2357_v2 }
 0x28d   : > { %v1223_v37 = vmul.f32 1.442695, %v719_v3 }
 0x28f   : > { %v2362_v4 = vpop.f32.mrb[8].mxu1 }
 0x290   : > { %v3080_v39 = vpop.f32.mrb[9].mxu1  ;;  %v1229_v47 = vmul.f32 1.442695, %v2362_v4 }
 0x291   : > { %v1227_v61 = vmul.f32 1.442695, %v3080_v39 }
 0x293   : > { %v2376_v5 = vpop.f32.mrb[12].mxu0  ;;  %v3082_v42 = vpop.f32.mrb[10].mxu1 }
 0x294   : > { %v1245_v7 = vmul.f32 1.442695, %v2376_v5  ;;  %v1011_v8 = vpop.f32.mrb[13].mxu0  ;;  %v860_v9 = vpop.f32.mrb[11].mxu1  ;;  %v1233_v4 = vmul.f32 1.442695, %v3082_v42 }
 0x295   : > { %v1243_v11 = vmul.f32 1.442695, %v1011_v8  ;;  %v1231_v51 = vmul.f32 1.442695, %v860_v9 }
 0x296   : > { %2641 = vpow2.f32 %v1245_v7 }
 0x297   : > { %2643 = vpow2.f32 %v1243_v11  ;;  %v3084_v12 = vpop.f32.mrb[12].mxu1 }
 0x298   : > { %2645 = vpow2.f32 %v1217_v6  ;;  %v870_v13 = vpop.f32.mrb[13].mxu1  ;;  %v1237_v42 = vmul.f32 1.442695, %v3084_v12 }
 0x299   : > { %2647 = vpow2.f32 %v1215_v10  ;;  %v1235_v50 = vmul.f32 1.442695, %v870_v13 }
 0x29b   : > { %v2379_v14 = vpop.f32.mrb[14].mxu0  ;;  %v3086_v15 = vpop.f32.mrb[14].mxu1 }
 0x29c   : > { %v1249_v17 = vmul.f32 1.442695, %v2379_v14  ;;  %v1021_v18 = vpop.f32.mrb[15].mxu0  ;;  %v3088_v56 = vpop.f32.mrb[15].mxu1 }
 0x29d   : > { %v1247_v20 = vmul.f32 1.442695, %v1021_v18  ;;  %v1239_v5 = vmul.f32 1.442695, %v3088_v56 }
 0x29e   : > { %2649 = vpow2.f32 %v1249_v17  ;;  %v1241_v17 = vmul.f32 1.442695, %v3086_v15 }
 0x29f   : > { %2651 = vpow2.f32 %v1247_v20  ;;  %v3090_v21 = vpop.f32.mrb[16].mxu1 }
 0x2a0   : > { %v3092_v22 = vpop.eup %2641  ;;  %2653 = vpow2.f32 %v1221_v16  ;;  %v3094_v23 = vpop.f32.mrb[17].mxu1  ;;  %v1261_v20 = vmul.f32 1.442695, %v3090_v21 }
 0x2a1   : > { %v3096_v24 = vpop.eup %2643  ;;  %2655 = vpow2.f32 %v1219_v19  ;;  %v1326_v25 = vsel %vm477_vm1, %v3092_v22, 0.0  ;;  %v1259_v10 = vmul.f32 1.442695, %v3094_v23 }
 0x2a2   : > { %v3100_v26 = vpop.eup %2645  ;;  %1327 = vadd.xlane.f32.xlu0 %v1326_v25  ;;  %v1323_v27 = vsel %vm477_vm1, %v3096_v24, 0.0 }
 0x2a3   : > { %v3105_v31 = vpop.eup %2647  ;;  %1324 = vadd.xlane.f32.xlu1 %v1323_v27  ;;  %v2382_v32 = vpop.f32.mrb[16].mxu0  ;;  %v1284_v40 = vsel %vm477_vm1, %v3100_v26, 0.0 }
 0x2a4   : > { %v3107_v33 = vpop.f32.mrb[18].mxu1  ;;  %v1253_v35 = vmul.f32 1.442695, %v2382_v32  ;;  %v1031_v36 = vpop.f32.mrb[17].mxu0  ;;  %v1281_v43 = vsel %vm477_vm1, %v3105_v31, 0.0 }
 0x2a5   : > { %v1251_v38 = vmul.f32 1.442695, %v1031_v36  ;;  %v3112_v41 = vpop.f32.mrb[19].mxu1  ;;  %v1265_v27 = vmul.f32 1.442695, %v3107_v33 }
 0x2a6   : > { %2657 = vpow2.f32 %v1253_v35  ;;  %1285 = vadd.xlane.f32.xlu0 %v1284_v40 }
 0x2a7   : > { %2659 = vpow2.f32 %v1251_v38  ;;  %1282 = vadd.xlane.f32.xlu1 %v1281_v43  ;;  %v3116_v44 = vpop.f32.mrb[20].mxu1 }
 0x2a8   : > { %v3118_v45 = vpop.eup %2649  ;;  %2661 = vpow2.f32 %v1225_v34  ;;  %v3120_v48 = vpop.f32.mrb[21].mxu1 }
 0x2a9   : > { %v3122_v49 = vpop.eup %2651  ;;  %2663 = vpow2.f32 %v1223_v37  ;;  %v1332_v52 = vsel %vm477_vm1, %v3118_v45, 0.0 }
 0x2aa   : > { %v3126_v58 = vpop.eup %2653  ;;  %1333 = vadd.xlane.f32.xlu0 %v1332_v52  ;;  %v1329_v59 = vsel %vm477_vm1, %v3122_v49, 0.0  ;;  %2665 = vpow2.f32 %v1229_v47 }
 0x2ab   : > { %v3130_v60 = vpop.eup %2655  ;;  %1330 = vadd.xlane.f32.xlu1 %v1329_v59  ;;  %v3132_v28 = vpop.f32.mrb[18].mxu0  ;;  %2667 = vpow2.f32 %v1231_v51  ;;  %v1290_v46 = vsel %vm477_vm1, %v3126_v58, 0.0  ;;  %v247_v59 = vld [vmem:[%s3443_s2 + $0x40] sm:$0xff] }
 0x2ac   : > { %v3134_v30 = vpop.f32.mrb[22].mxu1  ;;  %v3137_v0 = vpop.f32.mrb[19].mxu0  ;;  %v1287_v2 = vsel %vm477_vm1, %v3130_v60, 0.0  ;;  %2669 = vpow2.f32 %v1227_v61  ;;  %v2832_v61 = vmov 0.0  }
 0x2ad   : > { %v3141_v1 = vpop.f32.mrb[23].mxu1  ;;  %2671 = vpow2.f32 %v1235_v50  ;;  %2416 = vmatprep.mubr.msk.f32.mxu0 %vm2831_vm3, %v2832_v61  ;;  %2435 = vmatprep.mubr.msk.f32.mxu1 %vm2831_vm3, %v2832_v61  ;;  %v248_v50 = vld [vmem:[%s3443_s2 + $0x48] sm:$0xff] }
 0x2ae   : > { %1291 = vadd.xlane.f32.xlu0 %v1290_v46  ;;  %2673 = vpow2.f32 %v1233_v4  ;;  %v1263_v46 = vmul.f32 1.442695, %v3112_v41  ;;  %v1267_v4 = vmul.f32 1.442695, %v3120_v48  ;;  %v1273_v41 = vmul.f32 1.442695, %v3134_v30 }
 0x2af   : > { %1288 = vadd.xlane.f32.xlu1 %v1287_v2  ;;  %2675 = vpow2.f32 %v1239_v5  ;;  %v1255_v2 = vmul.f32 1.442695, %v3137_v0  ;;  %v1269_v5 = vmul.f32 1.442695, %v3116_v44 }
 0x2b0   : > { %v3145_v3 = vpop.eup %2657  ;;  %2677 = vpow2.f32 %v1259_v10  ;;  %v1257_v10 = vmul.f32 1.442695, %v3132_v28 }
 0x2b1   : > { %v3148_v39 = vpop.eup %2659  ;;  %v1338_v6 = vsel %vm477_vm1, %v3145_v3, 0.0  ;;  %2679 = vpow2.f32 %v1237_v42 }
 0x2b2   : > { %v3153_v7 = vpop.eup %2661  ;;  %1339 = vadd.xlane.f32.xlu0 %v1338_v6  ;;  %v1335_v8 = vsel %vm477_vm1, %v3148_v39, 0.0  ;;  %2681 = vpow2.f32 %v1241_v17  ;;  %v1271_v6 = vmul.f32 1.442695, %v3141_v1 }
 0x2b3   : > { %v3157_v9 = vpop.eup %2663  ;;  %1336 = vadd.xlane.f32.xlu1 %v1335_v8  ;;  %v1296_v11 = vsel %vm477_vm1, %v3153_v7, 0.0  ;;  %2683 = vpow2.f32 %v1261_v20 }
 0x2b4   : > { %v3163_v13 = vpop.eup %2665  ;;  %v1293_v14 = vsel %vm477_vm1, %v3157_v9, 0.0  ;;  %2685 = vpow2.f32 %v1265_v27  ;;  %v249_v27 = vld [vmem:[%s3443_s2 + $0x50] sm:$0xff] }
 0x2b5   : > { %v3167_v16 = vpop.eup %2667  ;;  %v1302_v12 = vsel %vm477_vm1, %v3163_v13, 0.0  ;;  %2687 = vpow2.f32 %v1263_v46 }
 0x2b6   : > { %1297 = vadd.xlane.f32.xlu0 %v1296_v11  ;;  %v3172_v18 = vpop.eup %2669  ;;  %v1305_v56 = vsel %vm477_vm1, %v3167_v16, 0.0  ;;  %2689 = vpow2.f32 %v1255_v2 }
 0x2b7   : > { %1294 = vadd.xlane.f32.xlu1 %v1293_v14  ;;  %v3176_v19 = vpop.eup %2671  ;;  %v1299_v23 = vsel %vm477_vm1, %v3172_v18, 0.0  ;;  %2691 = vpow2.f32 %v1267_v4 }
 0x2b8   : > { %v3181_v25 = vpop.eup %2673  ;;  %v1311_v15 = vsel %vm477_vm1, %v3176_v19, 0.0  ;;  %2693 = vpow2.f32 %v1269_v5  ;;  %v1925_v5 = vld [vmem:[%s3445_s4 + $0x10] sm:$0xff] }
 0x2b9   : > { %v3186_v32 = vpop.eup %2675  ;;  %v1308_v21 = vsel %vm477_vm1, %v3181_v25, 0.0  ;;  %2695 = vpow2.f32 %v1271_v6 }
 0x2ba   : > { %1303 = vadd.xlane.f32.xlu0 %v1302_v12  ;;  %v3188_v34 = vpop.eup %2677  ;;  %v1317_v36 = vsel %vm477_vm1, %v3186_v32, 0.0  ;;  %2697 = vpow2.f32 %v1257_v10 }
 0x2bb   : > { %1306 = vadd.xlane.f32.xlu1 %v1305_v56  ;;  %v3192_v35 = vpop.eup %2679  ;;  %v1347_v33 = vsel %vm477_vm1, %v3188_v34, 0.0  ;;  %2699 = vpow2.f32 %v1273_v41 }
 0x2bc   : > { %v1314_v37 = vsel %vm477_vm1, %v3192_v35, 0.0  ;;  %v3200_v38 = vpop.eup %2681 }
 0x2bd   : > { %v1320_v40 = vsel %vm477_vm1, %v3200_v38, 0.0  ;;  %v3204_v43 = vpop.eup %2683 }
 0x2be   : > { %1300 = vadd.xlane.f32.xlu0 %v1299_v23  ;;  %v3206_v47 = vpop.eup %2685  ;;  %v1350_v51 = vsel %vm477_vm1, %v3204_v43, 0.0 }
 0x2bf   : > { %1312 = vadd.xlane.f32.xlu1 %v1311_v15  ;;  %v1356_v52 = vsel %vm477_vm1, %v3206_v47, 0.0  ;;  %v3227_v8 = vpop.eup %2687 }
 0x2c0   : > { %v3230_v42 = vpop.eup %2689  ;;  %v1353_v0 = vsel %vm477_vm1, %v3227_v8, 0.0 }
 0x2c1   : > { %v1341_v44 = vsel %vm477_vm1, %v3230_v42, 0.0  ;;  %v3237_v48 = vpop.eup %2691 }
 0x2c2   : > { %1309 = vadd.xlane.f32.xlu0 %v1308_v21  ;;  %v3239_v1 = vpop.eup %2693  ;;  %v1359_v28 = vsel %vm477_vm1, %v3237_v48, 0.0 }
 0x2c3   : > { %1318 = vadd.xlane.f32.xlu1 %v1317_v36  ;;  %v3243_v11 = vpop.eup %2695  ;;  %v1362_v30 = vsel %vm477_vm1, %v3239_v1, 0.0  ;;  %v1923_v36 = vld [vmem:[%s3445_s4] sm:$0xff] }
 0x2c4   : > { %v1365_v14 = vsel %vm477_vm1, %v3243_v11, 0.0  ;;  %v3249_v17 = vpop.eup %2697 }
 0x2c5   : > { %v3251_v12 = vpop.eup %2699  ;;  %v1344_v56 = vsel %vm477_vm1, %v3249_v17, 0.0 }
 0x2c6   : > { %1315 = vadd.xlane.f32.xlu0 %v1314_v37  ;;  %v1368_v20 = vsel %vm477_vm1, %v3251_v12, 0.0 }
 0x2c7   : > { %1348 = vadd.xlane.f32.xlu1 %v1347_v33 }
 0x2ca   : > { %1321 = vadd.xlane.f32.xlu0 %v1320_v40 }
 0x2ce   : > { %1351 = vadd.xlane.f32.xlu0 %v1350_v51 }
 0x2d2   : > { %1357 = vadd.xlane.f32.xlu0 %v1356_v52 }
 0x2d8   : > { %293 = vperm.xlu1 %2620, %v247_v59   ;;  %v1924_v59 = vld [vmem:[%s3445_s4 + $0x8] sm:$0xff] }
 0x2e8   : > { %298 = vperm.xlu0 %2619, %v248_v50  }
 0x2fc   : > { %1354 = vadd.xlane.f32.xlu1 %v1353_v0 }
 0x300   : > { %1342 = vadd.xlane.f32.xlu1 %v1341_v44 }
 0x304   : > { %1360 = vadd.xlane.f32.xlu1 %v1359_v28 }
 0x307   : > { %1363 = vadd.xlane.f32.xlu0 %v1362_v30 }
 0x308   : > { %1366 = vadd.xlane.f32.xlu1 %v1365_v14 }
 0x30b   : > { %1345 = vadd.xlane.f32.xlu0 %v1344_v56 }
 0x30f   : > { %v1280_v23 = vpop.xlane.xlu1 %1279  ;;  %1369 = vadd.xlane.f32.xlu0 %v1368_v20 }
 0x310   : > { %2701 = vrcp.f32 %v1280_v23  ;;  %v1277_v15 = vpop.xlane.xlu0 %1276 }
 0x311   : > { %2703 = vrcp.f32 %v1277_v15 }
 0x319   : > { %303 = vperm.xlu1 %2620, %v249_v27  }
 0x31a   : > { %v2702_v21 = vpop.eup %2701 }
 0x31b   : > { %v2704_v33 = vpop.eup %2703  ;;  %v1436_v37 = vmul.f32 %v2702_v21, %v3072_v62  ;;  %v250_v62 = vld [vmem:[%s3443_s2 + $0x58] sm:$0xff] }
 0x31c   : > { %v1435_v40 = vmul.f32 %v2704_v33, %v3074_v63  ;;  %v1926_v63 = vld [vmem:[%s3445_s4 + $0x18] sm:$0xff] }
 0x31d   : > { %v1468_v51 = vmax.f32 %v1436_v37, 1e-06  ;;  %1929 = vperm.xlu1 %2620, %v1923_v36  }
 0x31e   : > { %v1467_v52 = vmax.f32 %v1435_v40, 1e-06 }
 0x31f   : > { %v1500_v50 = vmin.f32 %v1468_v51, 1.0 }
 0x320   : > { %v1499_v46 = vmin.f32 %v1467_v52, 1.0 }
 0x321   : > { %1934 = vperm.xlu1 %2620, %v1924_v59  }
 0x322   : > { %v2499_v4 = vpack.c.bf16 %v1500_v50, %v1499_v46 }
 0x324   : > { %2501 = vmatpush3.bf16.xpose.msk.msra.mxu0 %vm3270_vm4, %v2499_v4 }
 0x325   : > { %308 = vperm.xlu0 %2619, %v250_v62   ;;  %1944 = vperm.xlu1 %2620, %v1926_v63  }
 0x326   : > { %2502 = vmatprep.subr.bf16.mxu0 %v2830_v29 }
 0x329   : > { %1939 = vperm.xlu0 %2619, %v1925_v5  }
 0x32f   : > { %v1328_v6 = vpop.xlane.xlu0 %1327 }
 0x330   : > { %v1325_v10 = vpop.xlane.xlu1 %1324 }
 0x333   : > { %v1286_v41 = vpop.xlane.xlu0 %1285 }
 0x334   : > { %2705 = vrcp.f32 %v1286_v41  ;;  %v1283_v0 = vpop.xlane.xlu1 %1282 }
 0x335   : > { %2707 = vrcp.f32 %v1283_v0 }
 0x337   : > { %v1334_v44 = vpop.xlane.xlu0 %1333 }
 0x338   : > { %v1331_v28 = vpop.xlane.xlu1 %1330 }
 0x33b   : > { %v1292_v30 = vpop.xlane.xlu0 %1291 }
 0x33c   : > { %2709 = vrcp.f32 %v1292_v30  ;;  %v1289_v14 = vpop.xlane.xlu1 %1288 }
 0x33d   : > { %2711 = vrcp.f32 %v1289_v14 }
 0x33e   : > { %v2706_v56 = vpop.eup %2705  ;;  %2713 = vrcp.f32 %v1328_v6 }
 0x33f   : > { %v2708_v20 = vpop.eup %2707  ;;  %v1438_v23 = vmul.f32 %v2706_v56, %v3100_v26  ;;  %v1340_v15 = vpop.xlane.xlu0 %1339  ;;  %2715 = vrcp.f32 %v1325_v10 }
 0x340   : > { %v1437_v27 = vmul.f32 %v2708_v20, %v3105_v31  ;;  %v1337_v21 = vpop.xlane.xlu1 %1336 }
 0x341   : > { %v1470_v36 = vmax.f32 %v1438_v23, 1e-06 }
 0x342   : > { %v1469_v33 = vmax.f32 %v1437_v27, 1e-06 }
 0x343   : > { %v1502_v37 = vmin.f32 %v1470_v36, 1.0  ;;  %v1298_v40 = vpop.xlane.xlu0 %1297 }
 0x344   : > { %v1501_v51 = vmin.f32 %v1469_v33, 1.0  ;;  %2717 = vrcp.f32 %v1298_v40  ;;  %v1295_v52 = vpop.xlane.xlu1 %1294 }
 0x345   : > { %2719 = vrcp.f32 %v1295_v52 }
 0x346   : > { %v2710_v59 = vpop.eup %2709  ;;  %v2503_v50 = vpack.c.bf16 %v1502_v37, %v1501_v51 }
 0x347   : > { %v2712_v46 = vpop.eup %2711  ;;  %v1440_v4 = vmul.f32 %v2710_v59, %v3126_v58  ;;  %v1304_v26 = vpop.xlane.xlu0 %1303 }
 0x348   : > { %v1439_v62 = vmul.f32 %v2712_v46, %v3130_v60  ;;  %2721 = vrcp.f32 %v1304_v26  ;;  %v1307_v31 = vpop.xlane.xlu1 %1306  ;;  %2505 = vmatpush3.bf16.xpose.msk.msra.mxu0 %vm3270_vm4, %v2503_v50  ;;  %v2714_v41 = vpop.eup %2713 }
 0x349   : > { %v1472_v63 = vmax.f32 %v1440_v4, 1e-06  ;;  %2506 = vmatprep.subr.bf16.mxu0 %v2830_v29  ;;  %2723 = vrcp.f32 %v1334_v44  ;;  %v2716_v58 = vpop.eup %2715 }
 0x34a   : > { %v1471_v5 = vmax.f32 %v1439_v62, 1e-06  ;;  %v1451_v37 = vmul.f32 %v2716_v58, %v3096_v24 }
 0x34b   : > { %v1504_v6 = vmin.f32 %v1472_v63, 1.0  ;;  %v1301_v10 = vpop.xlane.xlu0 %1300 }
 0x34c   : > { %v1503_v0 = vmin.f32 %v1471_v5, 1.0  ;;  %2725 = vrcp.f32 %v1301_v10  ;;  %v1313_v30 = vpop.xlane.xlu1 %1312  ;;  %v1483_v26 = vmax.f32 %v1451_v37, 1e-06 }
 0x34d   : > { %2727 = vrcp.f32 %v1331_v28  ;;  %v1452_v28 = vmul.f32 %v2714_v41, %v3092_v22 }
 0x34e   : > { %v2718_v14 = vpop.eup %2717  ;;  %2729 = vrcp.f32 %v1307_v31  ;;  %v2507_v60 = vpack.c.bf16 %v1504_v6, %v1503_v0 }
 0x34f   : > { %v2720_v56 = vpop.eup %2719  ;;  %v1442_v20 = vmul.f32 %v2718_v14, %v3153_v7  ;;  %v1310_v23 = vpop.xlane.xlu0 %1309  ;;  %v1484_v4 = vmax.f32 %v1452_v28, 1e-06 }
 0x350   : > { %v1441_v27 = vmul.f32 %v2720_v56, %v3157_v9  ;;  %2731 = vrcp.f32 %v1310_v23  ;;  %v1319_v36 = vpop.xlane.xlu1 %1318  ;;  %2509 = vmatpush3.bf16.xpose.msk.msra.mxu0 %vm3270_vm4, %v2507_v60 }
 0x351   : > { %v1474_v44 = vmax.f32 %v1442_v20, 1e-06  ;;  %2510 = vmatprep.subr.bf16.mxu0 %v2830_v29  ;;  %2733 = vrcp.f32 %v1340_v15  ;;  %v1516_v6 = vmin.f32 %v1484_v4, 1.0 }
 0x352   : > { %v2722_v33 = vpop.eup %2721  ;;  %v1473_v40 = vmax.f32 %v1441_v27, 1e-06 }
 0x353   : > { %v1506_v51 = vmin.f32 %v1474_v44, 1.0  ;;  %v1444_v7 = vmul.f32 %v2722_v33, %v3163_v13  ;;  %v1316_v52 = vpop.xlane.xlu0 %1315  ;;  %v2724_v50 = vpop.eup %2723 }
 0x354   : > { %v1505_v9 = vmin.f32 %v1473_v40, 1.0  ;;  %2735 = vrcp.f32 %v1316_v52  ;;  %v1349_v59 = vpop.xlane.xlu1 %1348  ;;  %v1454_v10 = vmul.f32 %v2724_v50, %v3118_v45 }
 0x355   : > { %2737 = vrcp.f32 %v1337_v21  ;;  %v1476_v22 = vmax.f32 %v1444_v7, 1e-06  ;;  %v1515_v21 = vmin.f32 %v1483_v26, 1.0 }
 0x356   : > { %v2726_v46 = vpop.eup %2725  ;;  %2739 = vrcp.f32 %v1313_v30  ;;  %v2511_v62 = vpack.c.bf16 %v1506_v51, %v1505_v9  ;;  %v1486_v44 = vmax.f32 %v1454_v10, 1e-06 }
 0x357   : > { %v2728_v31 = vpop.eup %2727  ;;  %v1443_v24 = vmul.f32 %v2726_v46, %v3172_v18  ;;  %v1322_v15 = vpop.xlane.xlu0 %1321  ;;  %v1508_v30 = vmin.f32 %v1476_v22, 1.0  ;;  %v2531_v45 = vpack.c.bf16 %v1516_v6, %v1515_v21 }
 0x358   : > { %v2730_v63 = vpop.eup %2729  ;;  %2513 = vmatpush3.bf16.xpose.msk.msra.mxu0 %vm3270_vm4, %v2511_v62  ;;  %v1453_v41 = vmul.f32 %v2728_v31, %v3122_v49  ;;  %v294_v0 = vpop.permute.xlu1 %293  ;;  %2741 = vrcp.f32 %v1322_v15 }
 0x359   : > { %v1475_v13 = vmax.f32 %v1443_v24, 1e-06  ;;  %2530 = vmatprep.subr.bf16.mxu0 %v2830_v29  ;;  %v1445_v58 = vmul.f32 %v2730_v63, %v3167_v16  ;;  %v455_v20 = vadd.f32 %v3066_v54, %v294_v0  ;;  %2743 = vrcp.f32 %v1319_v36 }
 0x35a   : > { %v2732_v5 = vpop.eup %2731  ;;  %v1485_v33 = vmax.f32 %v1453_v41, 1e-06  ;;  %v1518_v36 = vmin.f32 %v1486_v44, 1.0 }
 0x35b   : > { %v1507_v18 = vmin.f32 %v1475_v13, 1.0  ;;  %v1446_v14 = vmul.f32 %v2732_v5, %v3181_v25  ;;  %v2734_v60 = vpop.eup %2733  ;;  %v1477_v49 = vmax.f32 %v1445_v58, 1e-06  ;;  %v1352_v37 = vpop.xlane.xlu0 %1351 }
 0x35c   : > { %v1517_v40 = vmin.f32 %v1485_v33, 1.0  ;;  %v1456_v51 = vmul.f32 %v2734_v60, %v3145_v3  ;;  %2745 = vrcp.f32 %v1352_v37 }
 0x35d   : > { %v1478_v56 = vmax.f32 %v1446_v14, 1e-06  ;;  %v2515_v23 = vpack.c.bf16 %v1508_v30, %v1507_v18  ;;  %v1509_v52 = vmin.f32 %v1477_v49, 1.0  ;;  %2747 = vrcp.f32 %v1349_v59 }
 0x35e   : > { %v2736_v27 = vpop.eup %2735  ;;  %v2535_v62 = vpack.c.bf16 %v1518_v36, %v1517_v40 }
 0x35f   : > { %v2738_v28 = vpop.eup %2737  ;;  %2417 = vmatmul.mubr.msk.f32.vlgmr.msra.gmra.mrb[20].mxu0 %vm477_vm1, %v455_v20  ;;  %2517 = vmatpush3.bf16.xpose.msk.msra.mxu1 %vm3270_vm4, %v2515_v23  ;;  %v1510_v54 = vmin.f32 %v1478_v56, 1.0  ;;  %v1448_v25 = vmul.f32 %v2736_v27, %v3192_v35  ;;  %v1488_v35 = vmax.f32 %v1456_v51, 1e-06  ;;  %v1358_v58 = vpop.xlane.xlu0 %1357 }
 0x360   : > { %v2740_v16 = vpop.eup %2739  ;;  %2533 = vmatpush3.bf16.xpose.msk.msra.mxu0 %vm3270_vm4, %v2531_v45  ;;  %2518 = vmatprep.subr.bf16.mxu1 %v2830_v29  ;;  %v1455_v7 = vmul.f32 %v2738_v28, %v3148_v39  ;;  %2749 = vrcp.f32 %v1358_v58 }
 0x361   : > { %2534 = vmatprep.subr.bf16.mxu0 %v2830_v29  ;;  %2454 = vmatprep.mubr.msk.f32.mxu0 %vm2831_vm3, %v2832_v61  ;;  %v1447_v9 = vmul.f32 %v2740_v16, %v3176_v19  ;;  %v1480_v50 = vmax.f32 %v1448_v25, 1e-06  ;;  %v2519_v46 = vpack.c.bf16 %v1510_v54, %v1509_v52  ;;  %v1520_v19 = vmin.f32 %v1488_v35, 1.0 }
 0x362   : > { %v2742_v4 = vpop.eup %2741  ;;  %v1487_v26 = vmax.f32 %v1455_v7, 1e-06 }
 0x363   : > { %v1479_v31 = vmax.f32 %v1447_v9, 1e-06  ;;  %v2744_v22 = vpop.eup %2743  ;;  %v1512_v3 = vmin.f32 %v1480_v50, 1.0  ;;  %v1450_v39 = vmul.f32 %v2742_v4, %v3200_v38 }
 0x364   : > { %v1519_v24 = vmin.f32 %v1487_v26, 1.0  ;;  %v1449_v59 = vmul.f32 %v2744_v22, %v3186_v32 }
 0x365   : > { %v1511_v63 = vmin.f32 %v1479_v31, 1.0  ;;  %v1482_v13 = vmax.f32 %v1450_v39, 1e-06 }
 0x366   : > { %v2746_v5 = vpop.eup %2745  ;;  %v2539_v6 = vpack.c.bf16 %v1520_v19, %v1519_v24  ;;  %v1481_v21 = vmax.f32 %v1449_v59, 1e-06 }
 0x367   : > { %2521 = vmatpush3.bf16.xpose.msk.msra.mxu1 %vm3270_vm4, %v2519_v46  ;;  %v2523_v15 = vpack.c.bf16 %v1512_v3, %v1511_v63  ;;  %v2748_v10 = vpop.eup %2747  ;;  %v1514_v38 = vmin.f32 %v1482_v13, 1.0  ;;  %v1460_v41 = vmul.f32 %v2746_v5, %v3204_v43  ;;  %v299_v56 = vpop.permute.xlu0 %298 }
 0x368   : > { %2537 = vmatpush3.bf16.xpose.msk.msra.mxu0 %vm3270_vm4, %v2535_v62  ;;  %2522 = vmatprep.subr.bf16.mxu1 %v2830_v29  ;;  %v1513_v32 = vmin.f32 %v1481_v21, 1.0  ;;  %v1459_v0 = vmul.f32 %v2748_v10, %v3188_v34  ;;  %v460_v23 = vadd.f32 %v3064_v53, %v299_v56  ;;  %v1922_v56 = vld [vmem:[%s3444_s3 + $0x18] sm:$0xff] }
 0x369   : > { %2538 = vmatprep.subr.bf16.mxu0 %v2830_v29  ;;  %v1492_v30 = vmax.f32 %v1460_v41, 1e-06 }
 0x36a   : > { %v2527_v18 = vpack.c.bf16 %v1514_v38, %v1513_v32  ;;  %v1491_v14 = vmax.f32 %v1459_v0, 1e-06  ;;  %v2750_v44 = vpop.eup %2749  ;;  %v1921_v38 = vld [vmem:[%s3444_s3 + $0x10] sm:$0xff] }
 0x36b   : > { %v1524_v60 = vmin.f32 %v1492_v30, 1.0  ;;  %v1462_v33 = vmul.f32 %v2750_v44, %v3206_v47 }
 0x36c   : > { %v1523_v20 = vmin.f32 %v1491_v14, 1.0 }
 0x36d   : > { %v1494_v49 = vmax.f32 %v1462_v33, 1e-06 }
 0x36e   : > { %v2547_v43 = vpack.c.bf16 %v1524_v60, %v1523_v20  ;;  %v1920_v60 = vld [vmem:[%s3444_s3 + $0x8] sm:$0xff] }
 0x36f   : > { %2525 = vmatpush3.bf16.xpose.msk.msra.mxu1 %vm3270_vm4, %v2523_v15  ;;  %v1526_v37 = vmin.f32 %v1494_v49, 1.0 }
 0x370   : > { %2541 = vmatpush3.bf16.xpose.msk.msra.mxu0 %vm3270_vm4, %v2539_v6  ;;  %2526 = vmatprep.subr.bf16.mxu1 %v2830_v29 }
 0x371   : > { %2542 = vmatprep.subr.bf16.mxu0 %v2830_v29 }
 0x377   : > { %2529 = vmatpush3.bf16.xpose.msk.msra.mxu1 %vm3270_vm4, %v2527_v18 }
 0x378   : > { %2546 = vmatprep.subr.bf16.mxu1 %v2830_v29 }
 0x37e   : > { %2436 = vmatmul.mubr.msk.f32.vlgmr.msra.gmra.mrb[24].mxu1 %vm477_vm1, %v460_v23 }
 0x37f   : > { %2549 = vmatpush3.bf16.xpose.msk.msra.mxu1 %vm3270_vm4, %v2547_v43  ;;  %2473 = vmatprep.mubr.msk.f32.mxu1 %vm2831_vm3, %v2832_v61 }
 0x380   : > { %2550 = vmatprep.subr.bf16.mxu1 %v2830_v29 }
 0x389   : > { %v1355_v34 = vpop.xlane.xlu1 %1354 }
 0x38a   : > { %2751 = vrcp.f32 %v1355_v34 }
 0x38d   : > { %v1343_v27 = vpop.xlane.xlu1 %1342 }
 0x38e   : > { %2753 = vrcp.f32 %v1343_v27 }
 0x391   : > { %v1361_v53 = vpop.xlane.xlu1 %1360 }
 0x392   : > { %2755 = vrcp.f32 %v1361_v53 }
 0x394   : > { %v2752_v45 = vpop.eup %2751  ;;  %v1364_v28 = vpop.xlane.xlu0 %1363 }
 0x395   : > { %v1461_v16 = vmul.f32 %v2752_v45, %v3227_v8  ;;  %2757 = vrcp.f32 %v1364_v28  ;;  %v1367_v54 = vpop.xlane.xlu1 %1366 }
 0x396   : > { %2759 = vrcp.f32 %v1367_v54 }
 0x397   : > { %v1493_v61 = vmax.f32 %v1461_v16, 1e-06 }
 0x398   : > { %v1346_v25 = vpop.xlane.xlu0 %1345  ;;  %v2754_v40 = vpop.eup %2753 }
 0x399   : > { %v1525_v36 = vmin.f32 %v1493_v61, 1.0  ;;  %2761 = vrcp.f32 %v1346_v25  ;;  %v1457_v9 = vmul.f32 %v2754_v40, %v3230_v42 }
 0x39b   : > { %v2551_v51 = vpack.c.bf16 %v1526_v37, %v1525_v36  ;;  %v1489_v62 = vmax.f32 %v1457_v9, 1e-06 }
 0x39c   : > { %v2756_v7 = vpop.eup %2755  ;;  %v1370_v47 = vpop.xlane.xlu0 %1369 }
 0x39d   : > { %v1463_v52 = vmul.f32 %v2756_v7, %v3237_v48  ;;  %2763 = vrcp.f32 %v1370_v47  ;;  %2553 = vmatpush3.bf16.xpose.msk.msra.mxu1 %vm3270_vm4, %v2551_v51  ;;  %v1521_v63 = vmin.f32 %v1489_v62, 1.0 }
 0x39e   : > { %2554 = vmatprep.subr.bf16.mxu1 %v2830_v29 }
 0x39f   : > { %v2758_v8 = vpop.eup %2757  ;;  %v1495_v50 = vmax.f32 %v1463_v52, 1e-06 }
 0x3a0   : > { %v1464_v46 = vmul.f32 %v2758_v8, %v3239_v1  ;;  %v2760_v4 = vpop.eup %2759 }
 0x3a1   : > { %v1527_v31 = vmin.f32 %v1495_v50, 1.0  ;;  %v1465_v48 = vmul.f32 %v2760_v4, %v3243_v11  ;;  %v304_v11 = vpop.permute.xlu1 %303 }
 0x3a2   : > { %v1496_v35 = vmax.f32 %v1464_v46, 1e-06  ;;  %v465_v21 = vadd.f32 %v3070_v57, %v304_v11 }
 0x3a3   : > { %v2762_v26 = vpop.eup %2761  ;;  %v1497_v59 = vmax.f32 %v1465_v48, 1e-06 }
 0x3a4   : > { %v1528_v22 = vmin.f32 %v1496_v35, 1.0  ;;  %v1458_v3 = vmul.f32 %v2762_v26, %v3249_v17 }
 0x3a5   : > { %v1529_v5 = vmin.f32 %v1497_v59, 1.0  ;;  %v1930_v20 = vpop.permute.xlu1 %1929 }
 0x3a6   : > { %v1490_v39 = vmax.f32 %v1458_v3, 1e-06  ;;  %v2555_v19 = vpack.c.bf16 %v1528_v22, %v1527_v31 }
 0x3a7   : > { %v2764_v24 = vpop.eup %2763 }
 0x3a8   : > { %v1522_v13 = vmin.f32 %v1490_v39, 1.0  ;;  %v1466_v42 = vmul.f32 %v2764_v24, %v3251_v12  ;;  %2557 = vmatpush3.bf16.xpose.msk.msra.mxu1 %vm3270_vm4, %v2555_v19  ;;  %v309_v12 = vpop.permute.xlu0 %308 }
 0x3a9   : > { %2558 = vmatprep.subr.bf16.mxu1 %v2830_v29  ;;  %v470_v10 = vadd.f32 %v3068_v55, %v309_v12  ;;  %v1919_v29 = vld [vmem:[%s3444_s3] sm:$0xff]  ;;  %v1935_v23 = vpop.permute.xlu1 %1934 }
 0x3aa   : > { %v1498_v1 = vmax.f32 %v1466_v42, 1e-06  ;;  %v2543_v15 = vpack.c.bf16 %v1522_v13, %v1521_v63 }
 0x3ac   : > { %v1530_v6 = vmin.f32 %v1498_v1, 1.0  ;;  %2545 = vmatpush3.bf16.xpose.msk.msra.mxu0 %vm3270_vm4, %v2543_v15  ;;  %v1940_v34 = vpop.permute.xlu0 %1939 }
 0x3ad   : > { %v1945_v43 = vpop.permute.xlu1 %1944 }
 0x3ae   : > { %v2559_v17 = vpack.c.bf16 %v1530_v6, %v1529_v5 }
 0x3b0   : > { %2561 = vmatpush3.bf16.xpose.msk.msra.mxu1 %vm3270_vm4, %v2559_v17 }
 0x3b3   : > { %2455 = vmatmul.mubr.msk.f32.vlgmr.msra.gmra.mrb[22].mxu0 %vm477_vm1, %v465_v21 }
 0x3b4   : > { %2484 = vmatprep.mubr.msk.f32.mxu0 %vm311_vm0, %v1919_v29 }
 0x3b7   : > { %2474 = vmatmul.mubr.msk.f32.vlgmr.msra.gmra.mrb[26].mxu1 %vm477_vm1, %v470_v10 }
 0x3b8   : > { %2487 = vmatprep.mubr.msk.f32.mxu1 %vm311_vm0, %v1921_v38 }
 0x432   : > { %v1624_v57 = vpop.f32.mrb[20].mxu0 }
 0x433   : > { %v2418_v2 = vpop.f32.mrb[21].mxu0 }
 0x451   : > { %v1721_v41 = vpop.f32.mrb[24].mxu1 }
 0x452   : > { %v2562_v32 = vpack.c.bf16 %v1721_v41, %v1624_v57  ;;  %v2437_v0 = vpop.f32.mrb[25].mxu1 }
 0x454   : > { %2563 = vmatprep.subr.bf16.mxu0 %v2562_v32  ;;  %2570 = vmatprep.subr.bf16.mxu1 %v2562_v32 }
 0x455   : > { %2565 = vmatpush3.bf16.msra.mxu0 %v2562_v32  ;;  %2572 = vmatpush3.bf16.msra.mxu1 %v2562_v32 }
 0x486   : > { %v1818_v55 = vpop.f32.mrb[22].mxu0 }
 0x487   : > { %v2456_v30 = vpop.f32.mrb[23].mxu0 }
 0x48a   : > { %v1915_v58 = vpop.f32.mrb[26].mxu1 }
 0x48b   : > { %v2566_v18 = vpack.c.bf16 %v1915_v58, %v1818_v55  ;;  %v2475_v14 = vpop.f32.mrb[27].mxu1 }
 0x48d   : > { %2567 = vmatprep.subr.bf16.mxu0 %v2566_v18  ;;  %2571 = vmatprep.subr.bf16.mxu1 %v2566_v18 }
 0x48e   : > { %2569 = vmatpush3.bf16.msra.mxu0 %v2566_v18  ;;  %2573 = vmatpush3.bf16.msra.mxu1 %v2566_v18 }
 0x491   : > { %2485 = vmatmul.mubr.msk.f32.vlgmr.msra.gmra.mrb[24].mxu0 %vm311_vm0, %v1920_v60  ;;  %2488 = vmatmul.mubr.msk.f32.vlgmr.msra.gmra.mrb[28].mxu1 %vm311_vm0, %v1922_v56 }
 0x564   : > { %v2486_v27 = vpop.f32.mrb[24].mxu0  ;;  %v2489_v44 = vpop.f32.mrb[28].mxu1 }
 0x565   : > { %v2031_v33 = vadd.f32 %v2486_v27, %v1935_v23  ;;  %v2041_v53 = vadd.f32 %v2489_v44, %v1945_v43  ;;  %v2025_v45 = vpop.f32.mrb[25].mxu0  ;;  %v2035_v28 = vpop.f32.mrb[29].mxu1 }
 0x566   : > { %v2026_v49 = vadd.f32 %v2025_v45, %v1930_v20  ;;  %v2036_v16 = vadd.f32 %v2035_v28, %v1940_v34 }
 0x567   : > { %2045 = vst.msk [vmem:[%s217_s12 + $0x8] sm:$0xff] %vm477_vm1, %v2031_v33  ;;  %2047 = vst.msk [vmem:[%s217_s12 + $0x18] sm:$0xff] %vm477_vm1, %v2041_v53 }
 0x568   : > { %2044 = vst.msk [vmem:[%s217_s12] sm:$0xff] %vm477_vm1, %v2026_v49  ;;  %2046 = vst.msk [vmem:[%s217_s12 + $0x10] sm:$0xff] %vm477_vm1, %v2036_v16 }
 0x569   : > { %2778 = shalt.err (!%p2775_p3)
}
 0x56a   : > { %s2779_s6 = scalar_lea.hbm %s3394_s17, 512  ;;  %s2783_s9 = scalar_lea.hbm %s3446_s5, 1024 }
 0x56b   : > { %p2780_p4 = scmp.ne.s32.totalorder %s3394_s17, %s2779_s6  ;;  %p2784_p9 = scmp.lt.u32.totalorder %s3394_s17, %s3446_s5 }
 0x56c   : > { %p2785_p10 = scmp.lt.u32.totalorder %s2783_s9, %s2779_s6  ;;  %p2787_p12 = scmp.lt.u32.totalorder %s2779_s6, %s3394_s17 }
 0x56d   : > { %p2781_p7 = pnand %p2780_p4, %p2904_p5 }
 0x56e   : > { %p2786_p11 = por %p2785_p10, %p2784_p9 }
 0x56f   : > { %p2782_p8 = pneg %p2781_p7 }
 0x570   : > { %p2788_p13 = por %p2787_p12, %p2786_p11 }
 0x572   : > { %p2789_p0 = pnand %p2788_p13, %p2782_p8 }
 0x574   : > { %2792 = shalt.err (!%p2789_p0)
}
 0x575   : > { %s2834_s12 = smov 128   ;;  %s2835_s14 = smov 8  }
 0x576   : > { %2574 = dma.vmem_to_hbm [thread:$0]  (%p2904_p5), %s3389_s13, 512, %s3394_s17, %s3400_s22, %s2834_s12, %s2834_s12, %s2835_s14  }
 0x577 PF: > { %p2580_p1 = scmp.ge.s32.totalorder %s2827_s21, 2  ;;  %s2077_s15 = sand.u32 1, %s2815_s18  }
 0x578   : > { %s2078_s16 = scalar_lea.sflag [#allocation3], %s2077_s15 }
 0x579   : > { %p2577_p2 = pnand %p2580_p1, %p2908_p6 }
 0x57b   : > { %2810 = dma.done.wait (!%p2577_p2), %s2078_s16, 512  }
 0x57c   : > { %2812 = vsyncadd (!%p2577_p2), %s2078_s16, 4294966784  ;;  %p15_p3 = scmp.ge.s32.totalorder %s2891_s24, 4   ;;  %s3451_s18 = smov %s2819_s19 }
 0x57d   : > { %s3452_s19 = smov %s2823_s20  ;;  %s3453_s20 = smov %s2902_s27 }
 0x57e   : > { %s3454_s21 = smov %s2891_s24  ;;  %17 = sbr.rel (!%p15_p3) target bundleno = 3 (0x3), region = 75 }
 0x585   :  { %2083 = vsyncpa [#allocation3], 1 }
 0x586   :  { %2085 = vsyncpa [#allocation3 + $0x1], 1 }

</bundles_post_ra>
